<compile_context>
chip_gen: v6e
topology: v6e:2x2x1
jax: 0.10.0
libtpu: 0.0.40
codegen_flags: <defaults>
</compile_context>

<pallas_src>
import functools
import math

import jax
import jax.numpy as jnp
import numpy as np
from jax.experimental import pallas as pl
from jax.experimental.pallas import tpu as pltpu


def _round_up(x, m):
    return ((x + m - 1) // m) * m


# ----------------------------------------------------------------------------
# Fused TCN kernel: all residual blocks for TB batch elements per grid step.
# ----------------------------------------------------------------------------
def _tcn_kernel(x_ref, w1_ref, b1_ref, w2_ref, b2_ref, w3_ref, b3_ref,
                out_ref, buf, *, num_layers, num_filters, kernel_size,
                dilation_base, conv3_slot, PAD, LP, TB):
    F = num_filters
    K = kernel_size
    STR = PAD + LP                    # lane stride of one batch element strip

    # Zero the whole buffer once per step.  This provides (a) the causal left
    # zero pad of every strip (never written again afterwards) and (b) the
    # zero rows 1..F-1 of the channel-padded layer-0 input — both are needed
    # fresh each step because the buffer persists across grid iterations.
    buf[...] = jnp.zeros(buf.shape, buf.dtype)
    for t in range(TB):
        # series (already zero-padded to LP host-side) -> channel 0 of strip t
        buf[0:1, t * STR + PAD:(t + 1) * STR] = x_ref[0, t:t + 1, :]

    def conv(xfull, w, b, dil):
        # xfull: (F, TB*STR) f32 with zeroed pad strips.
        # w: (F, K*F) bf16 im2col weights, b: (F, 1) f32.
        # Single MXU matmul over the full width; pad-strip output lanes are
        # junk but are never stored.
        taps = []
        for k in range(K):
            s = (K - 1 - k) * dil                  # causal shift of tap k
            taps.append(pltpu.roll(xfull, s, 1) if s else xfull)
        xcol = jnp.concatenate(taps, axis=0) if K > 1 else taps[0]
        y = jnp.dot(w, xcol.astype(jnp.bfloat16),
                    preferred_element_type=jnp.float32)
        return y + b

    for i in range(num_layers):
        d = dilation_base ** i
        xa = buf[...]                              # this block's input (f32)

        # conv1 -> ReLU      (dropout = identity in eval mode)
        h = jnp.maximum(conv(xa, w1_ref[i], b1_ref[i], d), 0.0)
        # (darts re-applies ReLU to this already-nonnegative padded tensor for
        #  non-last blocks — a mathematical no-op, omitted.)
        for t in range(TB):
            buf[:, t * STR + PAD:(t + 1) * STR] = \
                h[:, t * STR + PAD:(t + 1) * STR]

        # conv2              (dropout = identity)
        y = conv(buf[...], w2_ref[i], b2_ref[i], d)

        # skip connection
        j = conv3_slot[i]
        if j >= 0:                                 # 1x1 conv3 (first/last block)
            res = jnp.dot(w3_ref[j], xa.astype(jnp.bfloat16),
                          preferred_element_type=jnp.float32) + b3_ref[j]
        else:                                      # identity skip, kept f32
            res = xa
        out = y + res                              # (F, TB*STR)

        if i < num_layers - 1:
            for t in range(TB):
                buf[:, t * STR + PAD:(t + 1) * STR] = \
                    out[:, t * STR + PAD:(t + 1) * STR]
        else:
            # last block: only channel 0 is valid (cout was zero-padded to F)
            for t in range(TB):
                out_ref[0, t:t + 1, :] = out[0:1, t * STR + PAD:(t + 1) * STR]


# ----------------------------------------------------------------------------
# Host-side weight stacking: 6 refs, channel-padded, im2col layout, bf16.
# ----------------------------------------------------------------------------
def _stack_params(params, K, F):
    """params[i] = (w1, b1, w2, b2, w3|None, b3|None) in torch Conv1d layout:
    w (Cout, Cin, K), b (Cout,).  Returns stacked, zero channel-padded arrays
    with conv weights in im2col layout wcol[o, k*F + c] = W[o, c, k]."""
    def im2col(w):
        cout, cin, _ = w.shape
        w = jnp.pad(w, ((0, F - cout), (0, F - cin), (0, 0)))
        return jnp.transpose(w, (0, 2, 1)).reshape(F, K * F)

    def padb(b):
        return jnp.pad(b, (0, F - b.shape[0])).reshape(F, 1)

    w1s, b1s, w2s, b2s, w3s, b3s, slot = [], [], [], [], [], [], []
    for (w1, b1, w2, b2, w3, b3) in params:
        w1s.append(im2col(w1)); b1s.append(padb(b1))
        w2s.append(im2col(w2)); b2s.append(padb(b2))
        if w3 is not None:
            slot.append(len(w3s))
            co, ci, _ = w3.shape
            w3s.append(jnp.pad(w3[:, :, 0], ((0, F - co), (0, F - ci))))
            b3s.append(padb(b3))
        else:
            slot.append(-1)
    bf = jnp.bfloat16
    return (jnp.stack(w1s).astype(bf), jnp.stack(b1s),
            jnp.stack(w2s).astype(bf), jnp.stack(b2s),
            jnp.stack(w3s).astype(bf), jnp.stack(b3s), tuple(slot))


# ----------------------------------------------------------------------------
# Host-side wrapper: one fused pallas_call for the whole network.
# ----------------------------------------------------------------------------
def tcn_forward(x, params, *, kernel_size, dilation_base, num_filters):
    """x: (B, input_length, 1) float32 -> (B, input_length, 1) float32."""
    B, L, input_size = x.shape
    if input_size != 1:
        raise ValueError("darts _TCNModule's final view implies input_size == 1")
    num_layers = len(params)
    if num_layers < 1:
        raise ValueError("need at least one residual block")
    K, F = kernel_size, num_filters

    pad_max = (dilation_base ** (num_layers - 1)) * (K - 1)
    PAD = _round_up(max(pad_max, 1), 128)      # causal zero pad, 128-aligned
    LP = _round_up(L, 128)                     # lane-dense compute width

    # Grid: at most two steps (one per v7x TensorCore); each handles TB batch
    # elements packed along lanes.  On single-TC chips (v5e/v6e) the second
    # step is just one extra ~0.35 us loop iteration.
    G = 2 if B >= 2 else 1
    TB = -(-B // G)
    Bp = G * TB

    # (B, L, 1) -> (G, TB, LP), zero-padded batch/time.
    xs = jnp.pad(x[:, :, 0], ((0, Bp - B), (0, LP - L))).reshape(G, TB, LP)

    w1s, b1s, w2s, b2s, w3s, b3s, conv3_slot = _stack_params(params, K, F)

    kernel = functools.partial(
        _tcn_kernel, num_layers=num_layers, num_filters=F, kernel_size=K,
        dilation_base=dilation_base, conv3_slot=conv3_slot,
        PAD=PAD, LP=LP, TB=TB)

    def _full(a):
        return pl.BlockSpec(a.shape, lambda g, _nd=a.ndim: (0,) * _nd)

    out = pl.pallas_call(
        kernel,
        grid=(G,),
        in_specs=[pl.BlockSpec((1, TB, LP), lambda g: (g, 0, 0)),
                  _full(w1s), _full(b1s), _full(w2s), _full(b2s),
                  _full(w3s), _full(b3s)],
        out_specs=pl.BlockSpec((1, TB, LP), lambda g: (g, 0, 0)),
        out_shape=jax.ShapeDtypeStruct((G, TB, LP), jnp.float32),
        scratch_shapes=[pltpu.VMEM((F, TB * (PAD + LP)), jnp.float32)],
        compiler_params=pltpu.CompilerParams(
            dimension_semantics=("parallel",)),
    )(xs, w1s, b1s, w2s, b2s, w3s, b3s)

    return out.reshape(Bp, LP)[:B, :L].reshape(B, L, 1)


# ----------------------------------------------------------------------------
# Deterministic parameter init (mirrors nn.Conv1d default uniform init).
# Torch layout: weights (Cout, Cin, K), biases (Cout,).
# ----------------------------------------------------------------------------
def init_params(key, num_layers, num_filters, kernel_size):
    params = []
    for i in range(num_layers):
        cin = 1 if i == 0 else num_filters
        cout = 1 if i == num_layers - 1 else num_filters
        key, k0, k1, k2, k3, k4, k5 = jax.random.split(key, 7)

        def u(k, shape, fan_in):
            bound = 1.0 / math.sqrt(fan_in)
            return jax.random.uniform(k, shape, jnp.float32, -bound, bound)

        w1 = u(k0, (num_filters, cin, kernel_size), cin * kernel_size)
        b1 = u(k1, (num_filters,), cin * kernel_size)
        w2 = u(k2, (cout, num_filters, kernel_size), num_filters * kernel_size)
        b2 = u(k3, (cout,), num_filters * kernel_size)
        if i == 0 or i == num_layers - 1:
            w3 = u(k4, (cout, cin, 1), cin)
            b3 = u(k5, (cout,), cin)
        else:
            w3, b3 = None, None
        params.append((w1, b1, w2, b2, w3, b3))
    return params


# ----------------------------------------------------------------------------
# Pure-JAX reference (correctness check only).
# ----------------------------------------------------------------------------
def _ref_conv(x, w, b, dil):
    pad = dil * (w.shape[-1] - 1)
    y = jax.lax.conv_general_dilated(
        x, w, window_strides=(1,), padding=[(pad, 0)],
        rhs_dilation=(dil,), dimension_numbers=("NCH", "OIH", "NCH"),
        precision=jax.lax.Precision.HIGHEST)
    return y + b.reshape(1, -1, 1)


def ref_tcn_forward(x, params, *, dilation_base):
    B, L, _ = x.shape
    h = jnp.transpose(x, (0, 2, 1))                # (B, C, L)
    for i, (w1, b1, w2, b2, w3, b3) in enumerate(params):
        d = dilation_base ** i
        residual = h
        y = jax.nn.relu(_ref_conv(h, w1, b1, d))
        # darts' second ReLU (non-last blocks) hits an already-ReLU'd,
        # zero-padded tensor -> mathematical no-op.
        y = _ref_conv(y, w2, b2, d)
        if w3 is not None:
            residual = _ref_conv(residual, w3, b3, 1)
        h = y + residual
    return jnp.transpose(h, (0, 2, 1)).reshape(B, L, 1)


# ----------------------------------------------------------------------------
if __name__ == "__main__":
    # _TCNModule config (the module's final view to (B, L, 1) implies input_size=1)
    B = 4                    # folded into 2 grid steps x 2 elements per step
    input_length = 32
    input_size = 1
    num_filters = 8
    kernel_size = 3
    dilation_base = 2
    num_layers = 3

    key = jax.random.PRNGKey(0)
    kx, kp = jax.random.split(key)
    x = jax.random.normal(kx, (B, input_length, input_size), jnp.float32)
    params = init_params(kp, num_layers, num_filters, kernel_size)

    fwd = jax.jit(functools.partial(
        tcn_forward, kernel_size=kernel_size, dilation_base=dilation_base,
        num_filters=num_filters))

    y = jax.block_until_ready(fwd(x, params))
    assert y.shape == (B, input_length, 1)

    y_ref = jax.block_until_ready(
        ref_tcn_forward(x, params, dilation_base=dilation_base))
    # bf16 MXU operands with f32 accumulation -> tolerance covers bf16 rounding;
    # structural errors would show up as O(1) mismatches, far outside this.
    np.testing.assert_allclose(np.asarray(y), np.asarray(y_ref),
                               rtol=3e-2, atol=3e-2)
    print("KERNEL_OK")
</pallas_src>

<mosaic_0001>
module attributes {stable_mosaic.version = 11 : i64} {
  func.func @_tcn_kernel(%arg0: i32, %arg1: memref<1x2x128xf32, #tpu.memory_space<vmem>>, %arg2: memref<3x8x24xbf16, #tpu.memory_space<vmem>>, %arg3: memref<3x8x1xf32, #tpu.memory_space<vmem>>, %arg4: memref<3x8x24xbf16, #tpu.memory_space<vmem>>, %arg5: memref<3x8x1xf32, #tpu.memory_space<vmem>>, %arg6: memref<2x8x8xbf16, #tpu.memory_space<vmem>>, %arg7: memref<2x8x1xf32, #tpu.memory_space<vmem>>, %arg8: memref<1x2x128xf32, #tpu.memory_space<vmem>>, %arg9: memref<8x512xf32, #tpu.memory_space<vmem>>) attributes {dimension_semantics = [#tpu.dimension_semantics<parallel>], iteration_bounds = array<i64: 2>, scalar_prefetch = 0 : i64, scratch_operands = 1 : i64, tpu.core_type = #tpu.core_type<tc>, window_params = [{transform_indices = @transform_0, window_bounds = array<i64: 1, 2, 128>}, {pipeline_mode = #tpu.pipeline_mode<synchronous>, transform_indices = @transform_1, window_bounds = array<i64: 3, 8, 24>}, {pipeline_mode = #tpu.pipeline_mode<synchronous>, transform_indices = @transform_2, window_bounds = array<i64: 3, 8, 1>}, {pipeline_mode = #tpu.pipeline_mode<synchronous>, transform_indices = @transform_3, window_bounds = array<i64: 3, 8, 24>}, {pipeline_mode = #tpu.pipeline_mode<synchronous>, transform_indices = @transform_4, window_bounds = array<i64: 3, 8, 1>}, {pipeline_mode = #tpu.pipeline_mode<synchronous>, transform_indices = @transform_5, window_bounds = array<i64: 2, 8, 8>}, {pipeline_mode = #tpu.pipeline_mode<synchronous>, transform_indices = @transform_6, window_bounds = array<i64: 2, 8, 1>}, {transform_indices = @transform_7, window_bounds = array<i64: 1, 2, 128>}]} {
    %cst = arith.constant 0.000000e+00 : f32
    %0 = vector.broadcast %cst : f32 to vector<8x512xf32>
    %c0 = arith.constant 0 : index
    %c0_0 = arith.constant 0 : index
    %1 = vector.load %arg9[%c0, %c0_0] : memref<8x512xf32, #tpu.memory_space<vmem>>, vector<8x512xf32>
    tpu.vector_store %arg9[%c0, %c0_0], %0 {strides = array<i32>} : memref<8x512xf32, #tpu.memory_space<vmem>>, vector<8x512xf32>,
    %c0_1 = arith.constant 0 : index
    %c0_2 = arith.constant 0 : index
    %c0_3 = arith.constant 0 : index
    %2 = vector.load %arg1[%c0_1, %c0_2, %c0_3] : memref<1x2x128xf32, #tpu.memory_space<vmem>>, vector<1x1x128xf32>
    %3 = vector.shape_cast %2 : vector<1x1x128xf32> to vector<1x128xf32>
    %c0_4 = arith.constant 0 : index
    %c128 = arith.constant 128 : index
    %4 = vector.load %arg9[%c0_4, %c128] : memref<8x512xf32, #tpu.memory_space<vmem>>, vector<1x128xf32>
    tpu.vector_store %arg9[%c0_4, %c128], %3 {strides = array<i32>} : memref<8x512xf32, #tpu.memory_space<vmem>>, vector<1x128xf32>,
    %c0_5 = arith.constant 0 : index
    %c1 = arith.constant 1 : index
    %c0_6 = arith.constant 0 : index
    %5 = vector.load %arg1[%c0_5, %c1, %c0_6] : memref<1x2x128xf32, #tpu.memory_space<vmem>>, vector<1x1x128xf32>
    %6 = vector.shape_cast %5 : vector<1x1x128xf32> to vector<1x128xf32>
    %c0_7 = arith.constant 0 : index
    %c384 = arith.constant 384 : index
    %7 = vector.load %arg9[%c0_7, %c384] : memref<8x512xf32, #tpu.memory_space<vmem>>, vector<1x128xf32>
    tpu.vector_store %arg9[%c0_7, %c384], %6 {strides = array<i32>} : memref<8x512xf32, #tpu.memory_space<vmem>>, vector<1x128xf32>,
    %c0_8 = arith.constant 0 : index
    %c0_9 = arith.constant 0 : index
    %8 = vector.load %arg9[%c0_8, %c0_9] : memref<8x512xf32, #tpu.memory_space<vmem>>, vector<8x512xf32>
    %c0_10 = arith.constant 0 : index
    %c0_11 = arith.constant 0 : index
    %c0_12 = arith.constant 0 : index
    %9 = vector.load %arg2[%c0_10, %c0_11, %c0_12] : memref<3x8x24xbf16, #tpu.memory_space<vmem>>, vector<1x8x24xbf16>
    %10 = vector.shape_cast %9 : vector<1x8x24xbf16> to vector<8x24xbf16>
    %c0_13 = arith.constant 0 : index
    %c0_14 = arith.constant 0 : index
    %c0_15 = arith.constant 0 : index
    %11 = vector.load %arg3[%c0_13, %c0_14, %c0_15] : memref<3x8x1xf32, #tpu.memory_space<vmem>>, vector<1x8x1xf32>
    %12 = vector.shape_cast %11 : vector<1x8x1xf32> to vector<8x1xf32>
    %c2_i32 = arith.constant 2 : i32
    %13 = tpu.dynamic_rotate %8 by %c2_i32 dim 1 : vector<8x512xf32>, i32 -> vector<8x512xf32>
    %c1_i32 = arith.constant 1 : i32
    %14 = tpu.dynamic_rotate %8 by %c1_i32 dim 1 : vector<8x512xf32>, i32 -> vector<8x512xf32>
    %15 = tpu.concatenate %13, %14, %8 in 0 : vector<8x512xf32>, vector<8x512xf32>, vector<8x512xf32> -> vector<24x512xf32>
    %16 = arith.truncf %15 : vector<24x512xf32> to vector<24x512xbf16>
    %cst_16 = arith.constant dense<0.000000e+00> : vector<8x512xf32>
    %17 = tpu.matmul %10, %16, %cst_16 {dimension_numbers = #tpu.dot_dimension_numbers<[1], [0], [0], [1], [0, 0, 1, 1], [], []>} : vector<8x24xbf16>, vector<24x512xbf16>, vector<8x512xf32> -> vector<8x512xf32>
    %18 = vector.broadcast %12 : vector<8x1xf32> to vector<8x512xf32>
    %19 = arith.addf %17, %18 : vector<8x512xf32>
    %cst_17 = arith.constant 0.000000e+00 : f32
    %20 = vector.broadcast %cst_17 : f32 to vector<8x512xf32>
    %21 = arith.maximumf %19, %20 : vector<8x512xf32>
    %22 = vector.extract_strided_slice %21 {offsets = [0, 128], sizes = [8, 128], strides = [1, 1]} : vector<8x512xf32> to vector<8x128xf32>
    %c0_18 = arith.constant 0 : index
    %c128_19 = arith.constant 128 : index
    %23 = vector.load %arg9[%c0_18, %c128_19] : memref<8x512xf32, #tpu.memory_space<vmem>>, vector<8x128xf32>
    tpu.vector_store %arg9[%c0_18, %c128_19], %22 {strides = array<i32>} : memref<8x512xf32, #tpu.memory_space<vmem>>, vector<8x128xf32>,
    %24 = vector.extract_strided_slice %21 {offsets = [0, 384], sizes = [8, 128], strides = [1, 1]} : vector<8x512xf32> to vector<8x128xf32>
    %c0_20 = arith.constant 0 : index
    %c384_21 = arith.constant 384 : index
    %25 = vector.load %arg9[%c0_20, %c384_21] : memref<8x512xf32, #tpu.memory_space<vmem>>, vector<8x128xf32>
    tpu.vector_store %arg9[%c0_20, %c384_21], %24 {strides = array<i32>} : memref<8x512xf32, #tpu.memory_space<vmem>>, vector<8x128xf32>,
    %c0_22 = arith.constant 0 : index
    %c0_23 = arith.constant 0 : index
    %26 = vector.load %arg9[%c0_22, %c0_23] : memref<8x512xf32, #tpu.memory_space<vmem>>, vector<8x512xf32>
    %c0_24 = arith.constant 0 : index
    %c0_25 = arith.constant 0 : index
    %c0_26 = arith.constant 0 : index
    %27 = vector.load %arg4[%c0_24, %c0_25, %c0_26] : memref<3x8x24xbf16, #tpu.memory_space<vmem>>, vector<1x8x24xbf16>
    %28 = vector.shape_cast %27 : vector<1x8x24xbf16> to vector<8x24xbf16>
    %c0_27 = arith.constant 0 : index
    %c0_28 = arith.constant 0 : index
    %c0_29 = arith.constant 0 : index
    %29 = vector.load %arg5[%c0_27, %c0_28, %c0_29] : memref<3x8x1xf32, #tpu.memory_space<vmem>>, vector<1x8x1xf32>
    %30 = vector.shape_cast %29 : vector<1x8x1xf32> to vector<8x1xf32>
    %c2_i32_30 = arith.constant 2 : i32
    %31 = tpu.dynamic_rotate %26 by %c2_i32_30 dim 1 : vector<8x512xf32>, i32 -> vector<8x512xf32>
    %c1_i32_31 = arith.constant 1 : i32
    %32 = tpu.dynamic_rotate %26 by %c1_i32_31 dim 1 : vector<8x512xf32>, i32 -> vector<8x512xf32>
    %33 = tpu.concatenate %31, %32, %26 in 0 : vector<8x512xf32>, vector<8x512xf32>, vector<8x512xf32> -> vector<24x512xf32>
    %34 = arith.truncf %33 : vector<24x512xf32> to vector<24x512xbf16>
    %cst_32 = arith.constant dense<0.000000e+00> : vector<8x512xf32>
    %35 = tpu.matmul %28, %34, %cst_32 {dimension_numbers = #tpu.dot_dimension_numbers<[1], [0], [0], [1], [0, 0, 1, 1], [], []>} : vector<8x24xbf16>, vector<24x512xbf16>, vector<8x512xf32> -> vector<8x512xf32>
    %36 = vector.broadcast %30 : vector<8x1xf32> to vector<8x512xf32>
    %37 = arith.addf %35, %36 : vector<8x512xf32>
    %c0_33 = arith.constant 0 : index
    %c0_34 = arith.constant 0 : index
    %c0_35 = arith.constant 0 : index
    %38 = vector.load %arg6[%c0_33, %c0_34, %c0_35] : memref<2x8x8xbf16, #tpu.memory_space<vmem>>, vector<1x8x8xbf16>
    %39 = vector.shape_cast %38 : vector<1x8x8xbf16> to vector<8x8xbf16>
    %40 = arith.truncf %8 : vector<8x512xf32> to vector<8x512xbf16>
    %cst_36 = arith.constant dense<0.000000e+00> : vector<8x512xf32>
    %41 = tpu.matmul %39, %40, %cst_36 {dimension_numbers = #tpu.dot_dimension_numbers<[1], [0], [0], [1], [0, 0, 1, 1], [], []>} : vector<8x8xbf16>, vector<8x512xbf16>, vector<8x512xf32> -> vector<8x512xf32>
    %c0_37 = arith.constant 0 : index
    %c0_38 = arith.constant 0 : index
    %c0_39 = arith.constant 0 : index
    %42 = vector.load %arg7[%c0_37, %c0_38, %c0_39] : memref<2x8x1xf32, #tpu.memory_space<vmem>>, vector<1x8x1xf32>
    %43 = vector.shape_cast %42 : vector<1x8x1xf32> to vector<8x1xf32>
    %44 = vector.broadcast %43 : vector<8x1xf32> to vector<8x512xf32>
    %45 = arith.addf %41, %44 : vector<8x512xf32>
    %46 = arith.addf %37, %45 : vector<8x512xf32>
    %47 = vector.extract_strided_slice %46 {offsets = [0, 128], sizes = [8, 128], strides = [1, 1]} : vector<8x512xf32> to vector<8x128xf32>
    %c0_40 = arith.constant 0 : index
    %c128_41 = arith.constant 128 : index
    %48 = vector.load %arg9[%c0_40, %c128_41] : memref<8x512xf32, #tpu.memory_space<vmem>>, vector<8x128xf32>
    tpu.vector_store %arg9[%c0_40, %c128_41], %47 {strides = array<i32>} : memref<8x512xf32, #tpu.memory_space<vmem>>, vector<8x128xf32>,
    %49 = vector.extract_strided_slice %46 {offsets = [0, 384], sizes = [8, 128], strides = [1, 1]} : vector<8x512xf32> to vector<8x128xf32>
    %c0_42 = arith.constant 0 : index
    %c384_43 = arith.constant 384 : index
    %50 = vector.load %arg9[%c0_42, %c384_43] : memref<8x512xf32, #tpu.memory_space<vmem>>, vector<8x128xf32>
    tpu.vector_store %arg9[%c0_42, %c384_43], %49 {strides = array<i32>} : memref<8x512xf32, #tpu.memory_space<vmem>>, vector<8x128xf32>,
    %c0_44 = arith.constant 0 : index
    %c0_45 = arith.constant 0 : index
    %51 = vector.load %arg9[%c0_44, %c0_45] : memref<8x512xf32, #tpu.memory_space<vmem>>, vector<8x512xf32>
    %c1_46 = arith.constant 1 : index
    %c0_47 = arith.constant 0 : index
    %c0_48 = arith.constant 0 : index
    %52 = vector.load %arg2[%c1_46, %c0_47, %c0_48] : memref<3x8x24xbf16, #tpu.memory_space<vmem>>, vector<1x8x24xbf16>
    %53 = vector.shape_cast %52 : vector<1x8x24xbf16> to vector<8x24xbf16>
    %c1_49 = arith.constant 1 : index
    %c0_50 = arith.constant 0 : index
    %c0_51 = arith.constant 0 : index
    %54 = vector.load %arg3[%c1_49, %c0_50, %c0_51] : memref<3x8x1xf32, #tpu.memory_space<vmem>>, vector<1x8x1xf32>
    %55 = vector.shape_cast %54 : vector<1x8x1xf32> to vector<8x1xf32>
    %c4_i32 = arith.constant 4 : i32
    %56 = tpu.dynamic_rotate %51 by %c4_i32 dim 1 : vector<8x512xf32>, i32 -> vector<8x512xf32>
    %c2_i32_52 = arith.constant 2 : i32
    %57 = tpu.dynamic_rotate %51 by %c2_i32_52 dim 1 : vector<8x512xf32>, i32 -> vector<8x512xf32>
    %58 = tpu.concatenate %56, %57, %51 in 0 : vector<8x512xf32>, vector<8x512xf32>, vector<8x512xf32> -> vector<24x512xf32>
    %59 = arith.truncf %58 : vector<24x512xf32> to vector<24x512xbf16>
    %cst_53 = arith.constant dense<0.000000e+00> : vector<8x512xf32>
    %60 = tpu.matmul %53, %59, %cst_53 {dimension_numbers = #tpu.dot_dimension_numbers<[1], [0], [0], [1], [0, 0, 1, 1], [], []>} : vector<8x24xbf16>, vector<24x512xbf16>, vector<8x512xf32> -> vector<8x512xf32>
    %61 = vector.broadcast %55 : vector<8x1xf32> to vector<8x512xf32>
    %62 = arith.addf %60, %61 : vector<8x512xf32>
    %cst_54 = arith.constant 0.000000e+00 : f32
    %63 = vector.broadcast %cst_54 : f32 to vector<8x512xf32>
    %64 = arith.maximumf %62, %63 : vector<8x512xf32>
    %65 = vector.extract_strided_slice %64 {offsets = [0, 128], sizes = [8, 128], strides = [1, 1]} : vector<8x512xf32> to vector<8x128xf32>
    %c0_55 = arith.constant 0 : index
    %c128_56 = arith.constant 128 : index
    %66 = vector.load %arg9[%c0_55, %c128_56] : memref<8x512xf32, #tpu.memory_space<vmem>>, vector<8x128xf32>
    tpu.vector_store %arg9[%c0_55, %c128_56], %65 {strides = array<i32>} : memref<8x512xf32, #tpu.memory_space<vmem>>, vector<8x128xf32>,
    %67 = vector.extract_strided_slice %64 {offsets = [0, 384], sizes = [8, 128], strides = [1, 1]} : vector<8x512xf32> to vector<8x128xf32>
    %c0_57 = arith.constant 0 : index
    %c384_58 = arith.constant 384 : index
    %68 = vector.load %arg9[%c0_57, %c384_58] : memref<8x512xf32, #tpu.memory_space<vmem>>, vector<8x128xf32>
    tpu.vector_store %arg9[%c0_57, %c384_58], %67 {strides = array<i32>} : memref<8x512xf32, #tpu.memory_space<vmem>>, vector<8x128xf32>,
    %c0_59 = arith.constant 0 : index
    %c0_60 = arith.constant 0 : index
    %69 = vector.load %arg9[%c0_59, %c0_60] : memref<8x512xf32, #tpu.memory_space<vmem>>, vector<8x512xf32>
    %c1_61 = arith.constant 1 : index
    %c0_62 = arith.constant 0 : index
    %c0_63 = arith.constant 0 : index
    %70 = vector.load %arg4[%c1_61, %c0_62, %c0_63] : memref<3x8x24xbf16, #tpu.memory_space<vmem>>, vector<1x8x24xbf16>
    %71 = vector.shape_cast %70 : vector<1x8x24xbf16> to vector<8x24xbf16>
    %c1_64 = arith.constant 1 : index
    %c0_65 = arith.constant 0 : index
    %c0_66 = arith.constant 0 : index
    %72 = vector.load %arg5[%c1_64, %c0_65, %c0_66] : memref<3x8x1xf32, #tpu.memory_space<vmem>>, vector<1x8x1xf32>
    %73 = vector.shape_cast %72 : vector<1x8x1xf32> to vector<8x1xf32>
    %c4_i32_67 = arith.constant 4 : i32
    %74 = tpu.dynamic_rotate %69 by %c4_i32_67 dim 1 : vector<8x512xf32>, i32 -> vector<8x512xf32>
    %c2_i32_68 = arith.constant 2 : i32
    %75 = tpu.dynamic_rotate %69 by %c2_i32_68 dim 1 : vector<8x512xf32>, i32 -> vector<8x512xf32>
    %76 = tpu.concatenate %74, %75, %69 in 0 : vector<8x512xf32>, vector<8x512xf32>, vector<8x512xf32> -> vector<24x512xf32>
    %77 = arith.truncf %76 : vector<24x512xf32> to vector<24x512xbf16>
    %cst_69 = arith.constant dense<0.000000e+00> : vector<8x512xf32>
    %78 = tpu.matmul %71, %77, %cst_69 {dimension_numbers = #tpu.dot_dimension_numbers<[1], [0], [0], [1], [0, 0, 1, 1], [], []>} : vector<8x24xbf16>, vector<24x512xbf16>, vector<8x512xf32> -> vector<8x512xf32>
    %79 = vector.broadcast %73 : vector<8x1xf32> to vector<8x512xf32>
    %80 = arith.addf %78, %79 : vector<8x512xf32>
    %81 = arith.addf %80, %51 : vector<8x512xf32>
    %82 = vector.extract_strided_slice %81 {offsets = [0, 128], sizes = [8, 128], strides = [1, 1]} : vector<8x512xf32> to vector<8x128xf32>
    %c0_70 = arith.constant 0 : index
    %c128_71 = arith.constant 128 : index
    %83 = vector.load %arg9[%c0_70, %c128_71] : memref<8x512xf32, #tpu.memory_space<vmem>>, vector<8x128xf32>
    tpu.vector_store %arg9[%c0_70, %c128_71], %82 {strides = array<i32>} : memref<8x512xf32, #tpu.memory_space<vmem>>, vector<8x128xf32>,
    %84 = vector.extract_strided_slice %81 {offsets = [0, 384], sizes = [8, 128], strides = [1, 1]} : vector<8x512xf32> to vector<8x128xf32>
    %c0_72 = arith.constant 0 : index
    %c384_73 = arith.constant 384 : index
    %85 = vector.load %arg9[%c0_72, %c384_73] : memref<8x512xf32, #tpu.memory_space<vmem>>, vector<8x128xf32>
    tpu.vector_store %arg9[%c0_72, %c384_73], %84 {strides = array<i32>} : memref<8x512xf32, #tpu.memory_space<vmem>>, vector<8x128xf32>,
    %c0_74 = arith.constant 0 : index
    %c0_75 = arith.constant 0 : index
    %86 = vector.load %arg9[%c0_74, %c0_75] : memref<8x512xf32, #tpu.memory_space<vmem>>, vector<8x512xf32>
    %c2 = arith.constant 2 : index
    %c0_76 = arith.constant 0 : index
    %c0_77 = arith.constant 0 : index
    %87 = vector.load %arg2[%c2, %c0_76, %c0_77] : memref<3x8x24xbf16, #tpu.memory_space<vmem>>, vector<1x8x24xbf16>
    %88 = vector.shape_cast %87 : vector<1x8x24xbf16> to vector<8x24xbf16>
    %c2_78 = arith.constant 2 : index
    %c0_79 = arith.constant 0 : index
    %c0_80 = arith.constant 0 : index
    %89 = vector.load %arg3[%c2_78, %c0_79, %c0_80] : memref<3x8x1xf32, #tpu.memory_space<vmem>>, vector<1x8x1xf32>
    %90 = vector.shape_cast %89 : vector<1x8x1xf32> to vector<8x1xf32>
    %c8_i32 = arith.constant 8 : i32
    %91 = tpu.dynamic_rotate %86 by %c8_i32 dim 1 : vector<8x512xf32>, i32 -> vector<8x512xf32>
    %c4_i32_81 = arith.constant 4 : i32
    %92 = tpu.dynamic_rotate %86 by %c4_i32_81 dim 1 : vector<8x512xf32>, i32 -> vector<8x512xf32>
    %93 = tpu.concatenate %91, %92, %86 in 0 : vector<8x512xf32>, vector<8x512xf32>, vector<8x512xf32> -> vector<24x512xf32>
    %94 = arith.truncf %93 : vector<24x512xf32> to vector<24x512xbf16>
    %cst_82 = arith.constant dense<0.000000e+00> : vector<8x512xf32>
    %95 = tpu.matmul %88, %94, %cst_82 {dimension_numbers = #tpu.dot_dimension_numbers<[1], [0], [0], [1], [0, 0, 1, 1], [], []>} : vector<8x24xbf16>, vector<24x512xbf16>, vector<8x512xf32> -> vector<8x512xf32>
    %96 = vector.broadcast %90 : vector<8x1xf32> to vector<8x512xf32>
    %97 = arith.addf %95, %96 : vector<8x512xf32>
    %cst_83 = arith.constant 0.000000e+00 : f32
    %98 = vector.broadcast %cst_83 : f32 to vector<8x512xf32>
    %99 = arith.maximumf %97, %98 : vector<8x512xf32>
    %100 = vector.extract_strided_slice %99 {offsets = [0, 128], sizes = [8, 128], strides = [1, 1]} : vector<8x512xf32> to vector<8x128xf32>
    %c0_84 = arith.constant 0 : index
    %c128_85 = arith.constant 128 : index
    %101 = vector.load %arg9[%c0_84, %c128_85] : memref<8x512xf32, #tpu.memory_space<vmem>>, vector<8x128xf32>
    tpu.vector_store %arg9[%c0_84, %c128_85], %100 {strides = array<i32>} : memref<8x512xf32, #tpu.memory_space<vmem>>, vector<8x128xf32>,
    %102 = vector.extract_strided_slice %99 {offsets = [0, 384], sizes = [8, 128], strides = [1, 1]} : vector<8x512xf32> to vector<8x128xf32>
    %c0_86 = arith.constant 0 : index
    %c384_87 = arith.constant 384 : index
    %103 = vector.load %arg9[%c0_86, %c384_87] : memref<8x512xf32, #tpu.memory_space<vmem>>, vector<8x128xf32>
    tpu.vector_store %arg9[%c0_86, %c384_87], %102 {strides = array<i32>} : memref<8x512xf32, #tpu.memory_space<vmem>>, vector<8x128xf32>,
    %c0_88 = arith.constant 0 : index
    %c0_89 = arith.constant 0 : index
    %104 = vector.load %arg9[%c0_88, %c0_89] : memref<8x512xf32, #tpu.memory_space<vmem>>, vector<8x512xf32>
    %c2_90 = arith.constant 2 : index
    %c0_91 = arith.constant 0 : index
    %c0_92 = arith.constant 0 : index
    %105 = vector.load %arg4[%c2_90, %c0_91, %c0_92] : memref<3x8x24xbf16, #tpu.memory_space<vmem>>, vector<1x8x24xbf16>
    %106 = vector.shape_cast %105 : vector<1x8x24xbf16> to vector<8x24xbf16>
    %c2_93 = arith.constant 2 : index
    %c0_94 = arith.constant 0 : index
    %c0_95 = arith.constant 0 : index
    %107 = vector.load %arg5[%c2_93, %c0_94, %c0_95] : memref<3x8x1xf32, #tpu.memory_space<vmem>>, vector<1x8x1xf32>
    %108 = vector.shape_cast %107 : vector<1x8x1xf32> to vector<8x1xf32>
    %c8_i32_96 = arith.constant 8 : i32
    %109 = tpu.dynamic_rotate %104 by %c8_i32_96 dim 1 : vector<8x512xf32>, i32 -> vector<8x512xf32>
    %c4_i32_97 = arith.constant 4 : i32
    %110 = tpu.dynamic_rotate %104 by %c4_i32_97 dim 1 : vector<8x512xf32>, i32 -> vector<8x512xf32>
    %111 = tpu.concatenate %109, %110, %104 in 0 : vector<8x512xf32>, vector<8x512xf32>, vector<8x512xf32> -> vector<24x512xf32>
    %112 = arith.truncf %111 : vector<24x512xf32> to vector<24x512xbf16>
    %cst_98 = arith.constant dense<0.000000e+00> : vector<8x512xf32>
    %113 = tpu.matmul %106, %112, %cst_98 {dimension_numbers = #tpu.dot_dimension_numbers<[1], [0], [0], [1], [0, 0, 1, 1], [], []>} : vector<8x24xbf16>, vector<24x512xbf16>, vector<8x512xf32> -> vector<8x512xf32>
    %114 = vector.broadcast %108 : vector<8x1xf32> to vector<8x512xf32>
    %115 = arith.addf %113, %114 : vector<8x512xf32>
    %c1_99 = arith.constant 1 : index
    %c0_100 = arith.constant 0 : index
    %c0_101 = arith.constant 0 : index
    %116 = vector.load %arg6[%c1_99, %c0_100, %c0_101] : memref<2x8x8xbf16, #tpu.memory_space<vmem>>, vector<1x8x8xbf16>
    %117 = vector.shape_cast %116 : vector<1x8x8xbf16> to vector<8x8xbf16>
    %118 = arith.truncf %86 : vector<8x512xf32> to vector<8x512xbf16>
    %cst_102 = arith.constant dense<0.000000e+00> : vector<8x512xf32>
    %119 = tpu.matmul %117, %118, %cst_102 {dimension_numbers = #tpu.dot_dimension_numbers<[1], [0], [0], [1], [0, 0, 1, 1], [], []>} : vector<8x8xbf16>, vector<8x512xbf16>, vector<8x512xf32> -> vector<8x512xf32>
    %c1_103 = arith.constant 1 : index
    %c0_104 = arith.constant 0 : index
    %c0_105 = arith.constant 0 : index
    %120 = vector.load %arg7[%c1_103, %c0_104, %c0_105] : memref<2x8x1xf32, #tpu.memory_space<vmem>>, vector<1x8x1xf32>
    %121 = vector.shape_cast %120 : vector<1x8x1xf32> to vector<8x1xf32>
    %122 = vector.broadcast %121 : vector<8x1xf32> to vector<8x512xf32>
    %123 = arith.addf %119, %122 : vector<8x512xf32>
    %124 = arith.addf %115, %123 : vector<8x512xf32>
    %125 = vector.extract_strided_slice %124 {offsets = [0, 128], sizes = [1, 128], strides = [1, 1]} : vector<8x512xf32> to vector<1x128xf32>
    %c0_106 = arith.constant 0 : index
    %c0_107 = arith.constant 0 : index
    %c0_108 = arith.constant 0 : index
    %126 = vector.load %arg8[%c0_106, %c0_107, %c0_108] : memref<1x2x128xf32, #tpu.memory_space<vmem>>, vector<1x1x128xf32>
    %127 = vector.shape_cast %126 : vector<1x1x128xf32> to vector<1x128xf32>
    %128 = vector.shape_cast %125 : vector<1x128xf32> to vector<1x1x128xf32>
    tpu.vector_store %arg8[%c0_106, %c0_107, %c0_108], %128 {strides = array<i32>} : memref<1x2x128xf32, #tpu.memory_space<vmem>>, vector<1x1x128xf32>,
    %129 = vector.extract_strided_slice %124 {offsets = [0, 384], sizes = [1, 128], strides = [1, 1]} : vector<8x512xf32> to vector<1x128xf32>
    %c0_109 = arith.constant 0 : index
    %c1_110 = arith.constant 1 : index
    %c0_111 = arith.constant 0 : index
    %130 = vector.load %arg8[%c0_109, %c1_110, %c0_111] : memref<1x2x128xf32, #tpu.memory_space<vmem>>, vector<1x1x128xf32>
    %131 = vector.shape_cast %130 : vector<1x1x128xf32> to vector<1x128xf32>
    %132 = vector.shape_cast %129 : vector<1x128xf32> to vector<1x1x128xf32>
    tpu.vector_store %arg8[%c0_109, %c1_110, %c0_111], %132 {strides = array<i32>} : memref<1x2x128xf32, #tpu.memory_space<vmem>>, vector<1x1x128xf32>,
    return
  }
  func.func @transform_0(%arg0: i32) -> (i32, i32, i32) {
    %c0_i32 = arith.constant 0 : i32
    %c0_i32_0 = arith.constant 0 : i32
    %c0_i32_1 = arith.constant 0 : i32
    return %arg0, %c0_i32, %c0_i32_0 : i32, i32, i32
  }
  func.func @transform_1(%arg0: i32) -> (i32, i32, i32) {
    %c0_i32 = arith.constant 0 : i32
    %c0_i32_0 = arith.constant 0 : i32
    %c0_i32_1 = arith.constant 0 : i32
    %c0_i32_2 = arith.constant 0 : i32
    return %c0_i32, %c0_i32_0, %c0_i32_1 : i32, i32, i32
  }
  func.func @transform_2(%arg0: i32) -> (i32, i32, i32) {
    %c0_i32 = arith.constant 0 : i32
    %c0_i32_0 = arith.constant 0 : i32
    %c0_i32_1 = arith.constant 0 : i32
    %c0_i32_2 = arith.constant 0 : i32
    return %c0_i32, %c0_i32_0, %c0_i32_1 : i32, i32, i32
  }
  func.func @transform_3(%arg0: i32) -> (i32, i32, i32) {
    %c0_i32 = arith.constant 0 : i32
    %c0_i32_0 = arith.constant 0 : i32
    %c0_i32_1 = arith.constant 0 : i32
    %c0_i32_2 = arith.constant 0 : i32
    return %c0_i32, %c0_i32_0, %c0_i32_1 : i32, i32, i32
  }
  func.func @transform_4(%arg0: i32) -> (i32, i32, i32) {
    %c0_i32 = arith.constant 0 : i32
    %c0_i32_0 = arith.constant 0 : i32
    %c0_i32_1 = arith.constant 0 : i32
    %c0_i32_2 = arith.constant 0 : i32
    return %c0_i32, %c0_i32_0, %c0_i32_1 : i32, i32, i32
  }
  func.func @transform_5(%arg0: i32) -> (i32, i32, i32) {
    %c0_i32 = arith.constant 0 : i32
    %c0_i32_0 = arith.constant 0 : i32
    %c0_i32_1 = arith.constant 0 : i32
    %c0_i32_2 = arith.constant 0 : i32
    return %c0_i32, %c0_i32_0, %c0_i32_1 : i32, i32, i32
  }
  func.func @transform_6(%arg0: i32) -> (i32, i32, i32) {
    %c0_i32 = arith.constant 0 : i32
    %c0_i32_0 = arith.constant 0 : i32
    %c0_i32_1 = arith.constant 0 : i32
    %c0_i32_2 = arith.constant 0 : i32
    return %c0_i32, %c0_i32_0, %c0_i32_1 : i32, i32, i32
  }
  func.func @transform_7(%arg0: i32) -> (i32, i32, i32) {
    %c0_i32 = arith.constant 0 : i32
    %c0_i32_0 = arith.constant 0 : i32
    %c0_i32_1 = arith.constant 0 : i32
    return %arg0, %c0_i32, %c0_i32_0 : i32, i32, i32
  }
}

</mosaic_0001>

<bundles_post_ra>
// kernel: tcn_forward.1
= control target key start
LH: loop header
LB: loop body
LE: loop exit
PB: predicated region body
PF: predicated region fallthrough
CT: control target
= control target key end

     0   :  { %12 = vsyncpa [#allocation4], 0  ;;  %s2121_s0 = inlined_call_operand.vmem [shape: f32[2,2,128], index: 0, kind: input, shape index: {}]   ;;  %s2122_s1 = inlined_call_operand.vmem [shape: bf16[3,8,24], index: 1, kind: input, shape index: {}]   ;;  %s2123_s2 = inlined_call_operand.vmem [shape: f32[3,8,1], index: 2, kind: input, shape index: {}]   ;;  %s2124_s3 = inlined_call_operand.vmem [shape: bf16[3,8,24], index: 3, kind: input, shape index: {}]   ;;  %s2125_s4 = inlined_call_operand.vmem [shape: f32[3,8,1], index: 4, kind: input, shape index: {}]   ;;  %s2126_s5 = inlined_call_operand.vmem [shape: bf16[2,8,8], index: 5, kind: input, shape index: {}]   ;;  %s2127_s6 = inlined_call_operand.vmem [shape: f32[2,8,1], index: 6, kind: input, shape index: {}]   ;;  %s2128_s7 = inlined_call_operand.hbm [shape: f32[2,2,128], index: 7, kind: output, shape index: {}]  }
   0x1   :  { %14 = vsyncpa [#allocation4 + $0x1], 0  ;;  %s1736_s24 = smov 0   ;;  %s1738_s25 = smov 0  }
   0x2   :  { %s1740_s26 = smov 0   ;;  %s1742_s27 = smov 0  }
   0x3 LB: > { %s1757_s28 = sadd.s32 4294967295, %s1686_s27   ;;  %s1407_s29 = sadd.s32 4294967294, %s1686_s27   ;;  %s1686_s27 = sphi %s1742_s27, %s2134_s27   ;;  %s1682_s26 = sphi %s1740_s26, %s2133_s26   ;;  %s1678_s25 = sphi %s1738_s25, %s2132_s25   ;;  %s1674_s24 = sphi %s1736_s24, %s2131_s24  }
   0x4   : > { %s1761_s30 = sadd.s32 1, %s1686_s27   ;;  %s179_s8 = sadd.s32 1, %s1682_s26 }
   0x5   : > { %s176_s9 = ssub.s32 %s1686_s27, %s1761_s30  ;;  %p189_p0 = scmp.ne.s32.totalorder %s1682_s26, %s1678_s25 }
   0x6   : > { %p177_p1 = scmp.eq.s32.totalorder %s176_s9, 0  ;;  %p190_p2 = scmp.eq.s32.totalorder %s1757_s28, 1 }
   0x7   : > { %p195_p3 = scmp.ne.s32.totalorder %s1678_s25, %s1674_s24  ;;  %p196_p4 = scmp.eq.s32.totalorder %s1407_s29, 1 }
   0x8   : > { %s1772_s10 = scalar_select %p177_p1, %s1682_s26, %s179_s8  }
   0x9   : > { %p1774_p5 = por %p190_p2, %p189_p0  ;;  %p1778_p6 = por %p196_p4, %p195_p3 }
   0xa   : > { %p1410_p7 = scmp.ge.s32.totalorder %s1686_s27, 1  ;;  %p239_p8 = scmp.lt.s32.totalorder %s1686_s27, 3 }
   0xc   : > { %p240_p9 = pnand %p1410_p7, %p239_p8 }
   0xd   : > { %p270_p10 = scmp.lt.s32.totalorder (!%p240_p9), %s1757_s28, 1  ;;  %s1690_s18 = smov (!%p240_p9), 1  }
   0xe   : > { %243 = sbr.rel (%p240_p9) target bundleno = 2038 (0x7f6), region = 48  ;;  %s1691_s19 = smov (!%p240_p9), 2  }
   0xf   : > { %s267_s9 = sand.u32 (!%p240_p9), 1, %s1678_s25   ;;  %s1695_s23 = smov (!%p240_p9), [#allocation3]  }
  0x13   : > { %v1688_v0 = vmov 0.0   ;;  %s271_s13 = scalar_select %p270_p10, %s1757_s28, 1  ;;  %vm334_vm0 = vcmask 1043456   ;;  %v1689_v8 = vmov 0   ;;  %v1692_v10 = vmov 0.0|0.0   ;;  %v288_v11 = vld [vmem:[%s2123_s2] sm:$0xff] }
  0x14   : > { %276 = vst [vmem:[#allocation2] sm:$0xff] %v1688_v0  ;;  %278 = vst [vmem:[#allocation2 + $0x8] sm:$0xff] %v1688_v0  ;;  %379 = vmatprep.mubr.bf16.mxu0 %v1689_v8  ;;  %419 = vmatprep.mubr.bf16.mxu1 %v1689_v8  ;;  %v297_v12 = vlaneseq  ;;  %v287_v38 = vld [vmem:[%s2122_s1] sm:$0xf]  ;;  %vm330_vm3 = vcmask 195584   ;;  %vm576_vm4 = vcmask 64512  }
  0x15   : > { %s1412_s14 = sshll.u32 %s271_s13, 1  ;;  %1524 = vset.pattern.permute.xlu0 %v1689_v8  ;;  %1545 = vset.pattern.permute.xlu1 %v1689_v8  ;;  %v436_v55 = vld [vmem:[%s2125_s4] sm:$0xff]  ;;  %s1694_s13 = smov 8  }
  0x16   : > { %s273_s17 = scalar_lea.vmem %s2121_s0, %s1412_s14  ;;  %v1814_v13 = vand.u32 127, %v297_v12  ;;  %v570_v57 = vld [vmem:[%s2127_s6] sm:$0xff]  ;;  %s1456_s14 = sshll.u32 %s1757_s28, 5 }
  0x17   : > { %v279_v1 = vld [vmem:[%s273_s17] sm:$0x1]  ;;  %v281_v2 = vld [vmem:[%s273_s17 + $0x1] sm:$0x1]  ;;  %s2078_s21 = scalar_lea.hbm %s2128_s7, %s1456_s14  ;;  %s1335_s28 = scalar_lea.sflag [#allocation4], %s267_s9 }
  0x18   : > { %280 = vst [vmem:[#allocation2] sm:$0x1] %v279_v1  ;;  %282 = vst [vmem:[#allocation2 + $0x8] sm:$0x1] %v281_v2  ;;  %vm299_vm1 = vcmp.lt.s32.totalorder %v1814_v13, 2  ;;  %vm312_vm2 = vcmp.lt.s32.totalorder %v1814_v13, 1 }
  0x19   : > { %vm680_vm5 = vcmp.lt.s32.totalorder %v1814_v13, 4  ;;  %vm969_vm6 = vcmp.lt.s32.totalorder %v1814_v13, 8  ;;  %v1449_v13 = vld [vmem:[%s2126_s5 + $0x4] sm:$0xf] }
  0x1f   : > { %v284_v3 = vld [vmem:[#allocation2] sm:$0xff]  ;;  %v286_v4 = vld [vmem:[#allocation2 + $0x8] sm:$0xff] }
  0x20   : > { %v1514_v5 = vpack.i.bf16 %v284_v3, %v1688_v0  ;;  %v1792_v6 = vpack.c.bf16 %v284_v3, %v284_v3  ;;  %v1794_v7 = vpack.c.bf16 %v286_v4, %v286_v4  ;;  %v1519_v9 = vpack.i.bf16 %v286_v4, %v1688_v0 }
  0x22   : > { %1515 = vrot.lane.b32.xlu1 %v1514_v5, %s1690_s18  ;;  %1505 = vrot.lane.b32.xlu0 %v1514_v5, %s1691_s19 }
  0x23   : > { %1413 = vmatprep.subr.msk.bf16.mxu0 %vm334_vm0, %v1792_v6  ;;  %1415 = vmatprep.subr.msk.bf16.mxu1 %vm334_vm0, %v1794_v7 }
  0x24   : > { %360 = vmatpush1.bf16.msra.mxu0 %v1692_v10  ;;  %400 = vmatpush1.bf16.msra.mxu1 %v1692_v10 }
  0x26   : > { %1520 = vrot.lane.b32.xlu1 %v1519_v9, %s1690_s18  ;;  %1510 = vrot.lane.b32.xlu0 %v1519_v9, %s1691_s19 }
  0x2a   : > { %327 = vperm.xlu0 %1524, %v288_v11  }
  0x94   : > { %v1516_v14 = vpop.permute.xlu1 %1515  ;;  %v1506_v15 = vpop.permute.xlu0 %1505 }
  0x95   : > { %v1518_v16 = vunpack.i.h.bf16 %v1516_v14  ;;  %v1517_v17 = vunpack.i.l.bf16 %v1516_v14  ;;  %v1508_v18 = vunpack.i.h.bf16 %v1506_v15  ;;  %v1507_v19 = vunpack.i.l.bf16 %v1506_v15 }
  0x97   : > { %v302_v20 = vsel %vm299_vm1, %v1507_v19, %v1508_v18  ;;  %v315_v21 = vsel %vm312_vm2, %v1517_v17, %v1518_v16 }
  0x98   : > { %v1521_v22 = vpop.permute.xlu1 %1520  ;;  %v1511_v23 = vpop.permute.xlu0 %1510  ;;  %v318_v24 = vpack.c.bf16 %v315_v21, %v302_v20 }
  0x99   : > { %v1523_v25 = vunpack.i.h.bf16 %v1521_v22  ;;  %v1522_v26 = vunpack.i.l.bf16 %v1521_v22  ;;  %v1513_v27 = vunpack.i.h.bf16 %v1511_v23  ;;  %v1512_v28 = vunpack.i.l.bf16 %v1511_v23 }
  0x9a   : > { %361 = vmatprep.subr.bf16.mxu0 %v318_v24  ;;  %v435_v24 = vld [vmem:[%s2124_s3] sm:$0xf] }
  0x9b   : > { %v303_v29 = vsel %vm299_vm1, %v1513_v27, %v1507_v19  ;;  %v316_v30 = vsel %vm312_vm2, %v1523_v25, %v1517_v17  ;;  %v300_v31 = vsel %vm299_vm1, %v1512_v28, %v1513_v27  ;;  %v313_v32 = vsel %vm312_vm2, %v1522_v26, %v1523_v25  ;;  %v569_v25 = vld [vmem:[%s2126_s5] sm:$0xf] }
  0x9c   : > { %v317_v33 = vpack.c.bf16 %v316_v30, %v303_v29  ;;  %v320_v34 = vpack.c.bf16 %v313_v32, %v300_v31  ;;  %v301_v35 = vsel %vm299_vm1, %v1508_v18, %v1512_v28  ;;  %v314_v36 = vsel %vm312_vm2, %v1518_v16, %v1522_v26 }
  0x9d   : > { %v319_v37 = vpack.c.bf16 %v314_v36, %v301_v35 }
  0x9e   : > { %362 = vmatpush1.bf16.msra.mxu0 %v317_v33  ;;  %401 = vmatprep.subr.bf16.mxu1 %v320_v34 }
  0x9f   : > { %402 = vmatpush1.bf16.msra.mxu1 %v319_v37 }
  0xa1   : > { %1414 = vmatmul.mubr.msk.bf16.vlgmr.msra.gmra.mxu0 %vm330_vm3, %v287_v38 }
  0xa2   : > { %1416 = vmatmul.mubr.msk.bf16.vlgmr.msra.gmra.mxu1 %vm330_vm3, %v287_v38  ;;  %521 = vmatprep.mubr.bf16.mxu0 %v1689_v8 }
  0xa3   : > { %561 = vmatprep.mubr.bf16.mxu1 %v1689_v8 }
  0xa5   : > { %v328_v40 = vpop.permute.xlu0 %327 }
 0x161   : > { %v381_v39 = vpop.f32.mrf.mxu0 }
 0x162   : > { %v421_v41 = vpop.f32.mrf.mxu1 }
 0x163   : > { %v382_v42 = vpop.f32.mrf.mxu0 }
 0x164   : > { %v383_v43 = vadd.f32 %v382_v42, %v328_v40  ;;  %v422_v44 = vpop.f32.mrf.mxu1 }
 0x165   : > { %v423_v45 = vadd.f32 %v422_v44, %v328_v40  ;;  %v384_v46 = vpop.f32.mrf.mxu0 }
 0x166   : > { %v427_v47 = vmax.f32 %v383_v43, 0.0  ;;  %v424_v48 = vpop.f32.mrf.mxu1 }
 0x167   : > { %v428_v49 = vmax.f32 %v423_v45, 0.0  ;;  %v385_v50 = vpop.f32.mrf.mxu0 }
 0x168   : > { %v425_v51 = vpop.f32.mrf.mxu1  ;;  %v1535_v52 = vpack.i.bf16 %v427_v47, %v1688_v0  ;;  %v466_v53 = vpack.c.bf16 %v427_v47, %v427_v47 }
 0x169   : > { %v468_v54 = vpack.c.bf16 %v428_v49, %v428_v49  ;;  %v1530_v56 = vpack.i.bf16 %v428_v49, %v1688_v0 }
 0x16a   : > { %1536 = vrot.lane.b32.xlu0 %v1535_v52, %s1690_s18  ;;  %1526 = vrot.lane.b32.xlu1 %v1535_v52, %s1691_s19  ;;  %v1426_v52 = vld [vmem:[%s2123_s2 + $0x8] sm:$0xff] }
 0x16b   : > { %1417 = vmatprep.subr.msk.bf16.mxu0 %vm334_vm0, %v466_v53  ;;  %1419 = vmatprep.subr.msk.bf16.mxu1 %vm334_vm0, %v468_v54 }
 0x16c   : > { %502 = vmatpush1.bf16.msra.mxu0 %v1692_v10  ;;  %542 = vmatpush1.bf16.msra.mxu1 %v1692_v10 }
 0x16e   : > { %471 = vperm.xlu0 %1524, %v436_v55   ;;  %1531 = vrot.lane.b32.xlu1 %v1530_v56, %s1691_s19 }
 0x172   : > { %1541 = vrot.lane.b32.xlu1 %v1530_v56, %s1690_s18  ;;  %s1693_s18 = smov 4  }
 0x176   : > { %573 = vperm.xlu1 %1545, %v570_v57  }
 0x1dc   : > { %v1537_v58 = vpop.permute.xlu0 %1536  ;;  %v1527_v59 = vpop.permute.xlu1 %1526 }
 0x1dd   : > { %v1539_v60 = vunpack.i.h.bf16 %v1537_v58  ;;  %v1538_v61 = vunpack.i.l.bf16 %v1537_v58  ;;  %v1529_v62 = vunpack.i.h.bf16 %v1527_v59  ;;  %v1528_v63 = vunpack.i.l.bf16 %v1527_v59 }
 0x1df   : > { %v447_v1 = vsel %vm299_vm1, %v1528_v63, %v1529_v62  ;;  %v459_v2 = vsel %vm312_vm2, %v1538_v61, %v1539_v60 }
 0x1e0   : > { %v1532_v3 = vpop.permute.xlu1 %1531  ;;  %v462_v4 = vpack.c.bf16 %v459_v2, %v447_v1 }
 0x1e1   : > { %v1534_v5 = vunpack.i.h.bf16 %v1532_v3  ;;  %v1533_v9 = vunpack.i.l.bf16 %v1532_v3 }
 0x1e2   : > { %503 = vmatprep.subr.bf16.mxu0 %v462_v4 }
 0x1e3   : > { %v446_v15 = vsel %vm299_vm1, %v1529_v62, %v1533_v9  ;;  %v448_v16 = vsel %vm299_vm1, %v1534_v5, %v1528_v63  ;;  %v445_v19 = vsel %vm299_vm1, %v1533_v9, %v1534_v5 }
 0x1e4   : > { %v1542_v11 = vpop.permute.xlu1 %1541 }
 0x1e5   : > { %v1544_v12 = vunpack.i.h.bf16 %v1542_v11  ;;  %v1543_v14 = vunpack.i.l.bf16 %v1542_v11 }
 0x1e7   : > { %v460_v17 = vsel %vm312_vm2, %v1544_v12, %v1538_v61  ;;  %v458_v18 = vsel %vm312_vm2, %v1539_v60, %v1543_v14  ;;  %v457_v20 = vsel %vm312_vm2, %v1543_v14, %v1544_v12 }
 0x1e8   : > { %v461_v21 = vpack.c.bf16 %v460_v17, %v448_v16  ;;  %v463_v22 = vpack.c.bf16 %v458_v18, %v446_v15  ;;  %v464_v23 = vpack.c.bf16 %v457_v20, %v445_v19  ;;  %v1425_v19 = vld [vmem:[%s2122_s1 + $0x4] sm:$0xf] }
 0x1e9   : > { %v472_v35 = vpop.permute.xlu0 %471 }
 0x1ea   : > { %504 = vmatpush1.bf16.msra.mxu0 %v461_v21  ;;  %543 = vmatprep.subr.bf16.mxu1 %v464_v23 }
 0x1eb   : > { %544 = vmatpush1.bf16.msra.mxu1 %v463_v22  ;;  %1421 = vmatprep.subr.msk.bf16.mxu0 %vm334_vm0, %v1792_v6 }
 0x1ec   : > { %1423 = vmatprep.subr.msk.bf16.mxu1 %vm334_vm0, %v1794_v7 }
 0x1ed   : > { %1418 = vmatmul.mubr.msk.bf16.vlgmr.msra.gmra.mxu0 %vm330_vm3, %v435_v24 }
 0x1ee   : > { %1420 = vmatmul.mubr.msk.bf16.vlgmr.msra.gmra.mxu1 %vm330_vm3, %v435_v24  ;;  %595 = vmatpush1.bf16.msra.mxu0 %v1692_v10 }
 0x1ef   : > { %635 = vmatpush1.bf16.msra.mxu1 %v1692_v10  ;;  %612 = vmatprep.mubr.bf16.mxu0 %v1689_v8 }
 0x1f0   : > { %652 = vmatprep.mubr.bf16.mxu1 %v1689_v8 }
 0x1f1   : > { %v574_v33 = vpop.permute.xlu1 %573 }
 0x1f5   : > { %1422 = vmatmul.mubr.msk.bf16.vlgmr.msra.gmra.mxu0 %vm576_vm4, %v569_v25 }
 0x1f6   : > { %1424 = vmatmul.mubr.msk.bf16.vlgmr.msra.gmra.mxu1 %vm576_vm4, %v569_v25  ;;  %757 = vmatprep.mubr.bf16.mxu0 %v1689_v8 }
 0x1f7   : > { %797 = vmatprep.mubr.bf16.mxu1 %v1689_v8 }
 0x2ad   : > { %v523_v6 = vpop.f32.mrf.mxu0 }
 0x2ae   : > { %v563_v7 = vpop.f32.mrf.mxu1 }
 0x2af   : > { %v524_v26 = vpop.f32.mrf.mxu0 }
 0x2b0   : > { %v564_v27 = vpop.f32.mrf.mxu1  ;;  %v525_v37 = vadd.f32 %v524_v26, %v472_v35 }
 0x2b1   : > { %v526_v28 = vpop.f32.mrf.mxu0  ;;  %v565_v40 = vadd.f32 %v564_v27, %v472_v35  ;;  %v1432_v35 = vld [vmem:[%s2125_s4 + $0x8] sm:$0xff] }
 0x2b2   : > { %v566_v29 = vpop.f32.mrf.mxu1 }
 0x2b3   : > { %v527_v30 = vpop.f32.mrf.mxu0 }
 0x2b4   : > { %v567_v31 = vpop.f32.mrf.mxu1 }
 0x2b5   : > { %v614_v32 = vpop.f32.mrf.mxu0 }
 0x2b6   : > { %v654_v34 = vpop.f32.mrf.mxu1 }
 0x2b7   : > { %v615_v36 = vpop.f32.mrf.mxu0 }
 0x2b8   : > { %v616_v38 = vadd.f32 %v615_v36, %v574_v33  ;;  %v655_v39 = vpop.f32.mrf.mxu1 }
 0x2b9   : > { %v656_v41 = vadd.f32 %v655_v39, %v574_v33  ;;  %v617_v42 = vpop.f32.mrf.mxu0 }
 0x2ba   : > { %v1893_v43 = vadd.f32 %v616_v38, %v525_v37  ;;  %v657_v44 = vpop.f32.mrf.mxu1 }
 0x2bb   : > { %v1895_v45 = vadd.f32 %v656_v41, %v565_v40  ;;  %v618_v46 = vpop.f32.mrf.mxu0 }
 0x2bc   : > { %v658_v47 = vpop.f32.mrf.mxu1  ;;  %v1546_v48 = vpack.i.bf16 %v1893_v43, %v1688_v0  ;;  %v702_v49 = vpack.c.bf16 %v1893_v43, %v1893_v43 }
 0x2bd   : > { %v1551_v50 = vpack.i.bf16 %v1895_v45, %v1688_v0  ;;  %v704_v51 = vpack.c.bf16 %v1895_v45, %v1895_v45 }
 0x2be   : > { %1547 = vrot.lane.b32.xlu0 %v1546_v48, %s1693_s18  ;;  %1427 = vmatprep.subr.msk.bf16.mxu0 %vm334_vm0, %v702_v49 }
 0x2bf   : > { %1552 = vrot.lane.b32.xlu1 %v1551_v50, %s1693_s18  ;;  %1429 = vmatprep.subr.msk.bf16.mxu1 %vm334_vm0, %v704_v51 }
 0x2c0   : > { %738 = vmatpush1.bf16.msra.mxu0 %v1692_v10  ;;  %778 = vmatpush1.bf16.msra.mxu1 %v1692_v10 }
 0x2c2   : > { %1557 = vrot.lane.b32.xlu0 %v1546_v48, %s1691_s19 }
 0x2c3   : > { %1562 = vrot.lane.b32.xlu1 %v1551_v50, %s1691_s19 }
 0x2c6   : > { %707 = vperm.xlu0 %1524, %v1426_v52  }
 0x330   : > { %v1548_v53 = vpop.permute.xlu0 %1547 }
 0x331   : > { %v1553_v54 = vpop.permute.xlu1 %1552  ;;  %v1550_v55 = vunpack.i.h.bf16 %v1548_v53  ;;  %v1549_v56 = vunpack.i.l.bf16 %v1548_v53 }
 0x332   : > { %v1555_v57 = vunpack.i.h.bf16 %v1553_v54  ;;  %v1554_v58 = vunpack.i.l.bf16 %v1553_v54 }
 0x333   : > { %v683_v2 = vsel %vm680_vm5, %v1549_v56, %v1550_v55 }
 0x334   : > { %v1558_v59 = vpop.permute.xlu0 %1557  ;;  %v682_v3 = vsel %vm680_vm5, %v1550_v55, %v1554_v58  ;;  %v684_v4 = vsel %vm680_vm5, %v1555_v57, %v1549_v56  ;;  %v681_v9 = vsel %vm680_vm5, %v1554_v58, %v1555_v57 }
 0x335   : > { %v1560_v60 = vunpack.i.h.bf16 %v1558_v59  ;;  %v1559_v61 = vunpack.i.l.bf16 %v1558_v59  ;;  %v1563_v62 = vpop.permute.xlu1 %1562 }
 0x336   : > { %v1565_v63 = vunpack.i.h.bf16 %v1563_v62  ;;  %v1564_v1 = vunpack.i.l.bf16 %v1563_v62  ;;  %v1431_v62 = vld [vmem:[%s2124_s3 + $0x4] sm:$0xf] }
 0x337   : > { %v695_v5 = vsel %vm299_vm1, %v1559_v61, %v1560_v60 }
 0x338   : > { %v694_v11 = vsel %vm299_vm1, %v1560_v60, %v1564_v1  ;;  %v696_v12 = vsel %vm299_vm1, %v1565_v63, %v1559_v61  ;;  %v698_v14 = vpack.c.bf16 %v695_v5, %v683_v2  ;;  %v693_v15 = vsel %vm299_vm1, %v1564_v1, %v1565_v63 }
 0x339   : > { %v697_v16 = vpack.c.bf16 %v696_v12, %v684_v4  ;;  %v699_v17 = vpack.c.bf16 %v694_v11, %v682_v3  ;;  %v700_v18 = vpack.c.bf16 %v693_v15, %v681_v9 }
 0x33a   : > { %739 = vmatprep.subr.bf16.mxu0 %v698_v14 }
 0x33b   : > { %740 = vmatpush1.bf16.msra.mxu0 %v697_v16  ;;  %779 = vmatprep.subr.bf16.mxu1 %v700_v18 }
 0x33c   : > { %780 = vmatpush1.bf16.msra.mxu1 %v699_v17 }
 0x33e   : > { %1428 = vmatmul.mubr.msk.bf16.vlgmr.msra.gmra.mxu0 %vm330_vm3, %v1425_v19 }
 0x33f   : > { %1430 = vmatmul.mubr.msk.bf16.vlgmr.msra.gmra.mxu1 %vm330_vm3, %v1425_v19  ;;  %901 = vmatprep.mubr.bf16.mxu0 %v1689_v8 }
 0x340   : > { %941 = vmatprep.mubr.bf16.mxu1 %v1689_v8 }
 0x341   : > { %v708_v22 = vpop.permute.xlu0 %707 }
 0x3fe   : > { %v759_v20 = vpop.f32.mrf.mxu0 }
 0x3ff   : > { %v799_v21 = vpop.f32.mrf.mxu1 }
 0x400   : > { %v760_v23 = vpop.f32.mrf.mxu0 }
 0x401   : > { %v761_v24 = vadd.f32 %v760_v23, %v708_v22  ;;  %v800_v25 = vpop.f32.mrf.mxu1 }
 0x402   : > { %v801_v6 = vadd.f32 %v800_v25, %v708_v22  ;;  %v762_v7 = vpop.f32.mrf.mxu0 }
 0x403   : > { %v805_v26 = vmax.f32 %v761_v24, 0.0  ;;  %v802_v27 = vpop.f32.mrf.mxu1 }
 0x404   : > { %v806_v28 = vmax.f32 %v801_v6, 0.0  ;;  %v763_v29 = vpop.f32.mrf.mxu0 }
 0x405   : > { %v803_v30 = vpop.f32.mrf.mxu1  ;;  %v1566_v31 = vpack.i.bf16 %v805_v26, %v1688_v0  ;;  %v846_v32 = vpack.c.bf16 %v805_v26, %v805_v26 }
 0x406   : > { %v1571_v33 = vpack.i.bf16 %v806_v28, %v1688_v0  ;;  %v848_v34 = vpack.c.bf16 %v806_v28, %v806_v28 }
 0x407   : > { %1567 = vrot.lane.b32.xlu1 %v1566_v31, %s1693_s18  ;;  %1433 = vmatprep.subr.msk.bf16.mxu0 %vm334_vm0, %v846_v32 }
 0x408   : > { %1572 = vrot.lane.b32.xlu0 %v1571_v33, %s1693_s18  ;;  %1435 = vmatprep.subr.msk.bf16.mxu1 %vm334_vm0, %v848_v34 }
 0x409   : > { %882 = vmatpush1.bf16.msra.mxu0 %v1692_v10  ;;  %922 = vmatpush1.bf16.msra.mxu1 %v1692_v10 }
 0x40b   : > { %1577 = vrot.lane.b32.xlu1 %v1566_v31, %s1691_s19 }
 0x40c   : > { %1582 = vrot.lane.b32.xlu0 %v1571_v33, %s1691_s19 }
 0x40f   : > { %851 = vperm.xlu1 %1545, %v1432_v35  }
 0x479   : > { %v1568_v36 = vpop.permute.xlu1 %1567 }
 0x47a   : > { %v1573_v37 = vpop.permute.xlu0 %1572  ;;  %v1570_v38 = vunpack.i.h.bf16 %v1568_v36  ;;  %v1569_v39 = vunpack.i.l.bf16 %v1568_v36 }
 0x47b   : > { %v1575_v40 = vunpack.i.h.bf16 %v1573_v37  ;;  %v1574_v41 = vunpack.i.l.bf16 %v1573_v37 }
 0x47c   : > { %v827_v50 = vsel %vm680_vm5, %v1569_v39, %v1570_v38 }
 0x47d   : > { %v1578_v42 = vpop.permute.xlu1 %1577  ;;  %v826_v51 = vsel %vm680_vm5, %v1570_v38, %v1574_v41  ;;  %v828_v52 = vsel %vm680_vm5, %v1575_v40, %v1569_v39  ;;  %v825_v54 = vsel %vm680_vm5, %v1574_v41, %v1575_v40 }
 0x47e   : > { %v1580_v44 = vunpack.i.h.bf16 %v1578_v42  ;;  %v1579_v46 = vunpack.i.l.bf16 %v1578_v42  ;;  %v1583_v47 = vpop.permute.xlu0 %1582 }
 0x47f   : > { %v1585_v48 = vunpack.i.h.bf16 %v1583_v47  ;;  %v1584_v49 = vunpack.i.l.bf16 %v1583_v47 }
 0x480   : > { %v839_v53 = vsel %vm299_vm1, %v1579_v46, %v1580_v44 }
 0x481   : > { %v838_v55 = vsel %vm299_vm1, %v1580_v44, %v1584_v49  ;;  %v840_v56 = vsel %vm299_vm1, %v1585_v48, %v1579_v46  ;;  %v842_v57 = vpack.c.bf16 %v839_v53, %v827_v50  ;;  %v837_v58 = vsel %vm299_vm1, %v1584_v49, %v1585_v48  ;;  %v1437_v44 = vld [vmem:[%s2122_s1 + $0x8] sm:$0xf] }
 0x482   : > { %v841_v59 = vpack.c.bf16 %v840_v56, %v828_v52  ;;  %v843_v60 = vpack.c.bf16 %v838_v55, %v826_v51  ;;  %v844_v61 = vpack.c.bf16 %v837_v58, %v825_v54 }
 0x483   : > { %883 = vmatprep.subr.bf16.mxu0 %v842_v57 }
 0x484   : > { %884 = vmatpush1.bf16.msra.mxu0 %v841_v59  ;;  %923 = vmatprep.subr.bf16.mxu1 %v844_v61 }
 0x485   : > { %924 = vmatpush1.bf16.msra.mxu1 %v843_v60 }
 0x487   : > { %1434 = vmatmul.mubr.msk.bf16.vlgmr.msra.gmra.mxu0 %vm330_vm3, %v1431_v62 }
 0x488   : > { %1436 = vmatmul.mubr.msk.bf16.vlgmr.msra.gmra.mxu1 %vm330_vm3, %v1431_v62  ;;  %1046 = vmatprep.mubr.bf16.mxu0 %v1689_v8 }
 0x489   : > { %1086 = vmatprep.mubr.bf16.mxu1 %v1689_v8 }
 0x48a   : > { %v852_v2 = vpop.permute.xlu1 %851 }
 0x547   : > { %v903_v63 = vpop.f32.mrf.mxu0 }
 0x548   : > { %v943_v1 = vpop.f32.mrf.mxu1  ;;  %v1450_v63 = vld [vmem:[%s2127_s6 + $0x8] sm:$0xff] }
 0x549   : > { %v904_v3 = vpop.f32.mrf.mxu0 }
 0x54a   : > { %v905_v4 = vadd.f32 %v904_v3, %v852_v2  ;;  %v944_v5 = vpop.f32.mrf.mxu1 }
 0x54b   : > { %v945_v9 = vadd.f32 %v944_v5, %v852_v2  ;;  %v906_v11 = vpop.f32.mrf.mxu0 }
 0x54c   : > { %v949_v12 = vadd.f32 %v905_v4, %v1893_v43  ;;  %v946_v14 = vpop.f32.mrf.mxu1  ;;  %v1438_v43 = vld [vmem:[%s2123_s2 + $0x10] sm:$0xff] }
 0x54d   : > { %v950_v15 = vadd.f32 %v945_v9, %v1895_v45  ;;  %v907_v16 = vpop.f32.mrf.mxu0 }
 0x54e   : > { %v947_v17 = vpop.f32.mrf.mxu1  ;;  %v1586_v18 = vpack.i.bf16 %v949_v12, %v1688_v0  ;;  %v1979_v19 = vpack.c.bf16 %v949_v12, %v949_v12 }
 0x54f   : > { %v1591_v20 = vpack.i.bf16 %v950_v15, %v1688_v0  ;;  %v1982_v21 = vpack.c.bf16 %v950_v15, %v950_v15 }
 0x550   : > { %1587 = vrot.lane.b32.xlu0 %v1586_v18, %s1694_s13  ;;  %1439 = vmatprep.subr.msk.bf16.mxu0 %vm334_vm0, %v1979_v19 }
 0x551   : > { %1592 = vrot.lane.b32.xlu1 %v1591_v20, %s1694_s13  ;;  %1441 = vmatprep.subr.msk.bf16.mxu1 %vm334_vm0, %v1982_v21 }
 0x552   : > { %1027 = vmatpush1.bf16.msra.mxu0 %v1692_v10  ;;  %1067 = vmatpush1.bf16.msra.mxu1 %v1692_v10 }
 0x554   : > { %1597 = vrot.lane.b32.xlu0 %v1586_v18, %s1693_s18 }
 0x555   : > { %1602 = vrot.lane.b32.xlu1 %v1591_v20, %s1693_s18 }
 0x558   : > { %996 = vperm.xlu0 %1524, %v1438_v43  }
 0x5c2   : > { %v1588_v45 = vpop.permute.xlu0 %1587 }
 0x5c3   : > { %v1593_v22 = vpop.permute.xlu1 %1592  ;;  %v1590_v23 = vunpack.i.h.bf16 %v1588_v45  ;;  %v1589_v24 = vunpack.i.l.bf16 %v1588_v45 }
 0x5c4   : > { %v1595_v25 = vunpack.i.h.bf16 %v1593_v22  ;;  %v1594_v6 = vunpack.i.l.bf16 %v1593_v22 }
 0x5c5   : > { %v972_v31 = vsel %vm969_vm6, %v1589_v24, %v1590_v23 }
 0x5c6   : > { %v1598_v7 = vpop.permute.xlu0 %1597  ;;  %v971_v32 = vsel %vm969_vm6, %v1590_v23, %v1594_v6  ;;  %v973_v33 = vsel %vm969_vm6, %v1595_v25, %v1589_v24  ;;  %v970_v35 = vsel %vm969_vm6, %v1594_v6, %v1595_v25 }
 0x5c7   : > { %v1600_v26 = vunpack.i.h.bf16 %v1598_v7  ;;  %v1599_v27 = vunpack.i.l.bf16 %v1598_v7  ;;  %v1603_v28 = vpop.permute.xlu1 %1602 }
 0x5c8   : > { %v1605_v29 = vunpack.i.h.bf16 %v1603_v28  ;;  %v1604_v30 = vunpack.i.l.bf16 %v1603_v28  ;;  %v1443_v28 = vld [vmem:[%s2124_s3 + $0x8] sm:$0xf] }
 0x5c9   : > { %v984_v34 = vsel %vm680_vm5, %v1599_v27, %v1600_v26 }
 0x5ca   : > { %v983_v36 = vsel %vm680_vm5, %v1600_v26, %v1604_v30  ;;  %v985_v37 = vsel %vm680_vm5, %v1605_v29, %v1599_v27  ;;  %v987_v38 = vpack.c.bf16 %v984_v34, %v972_v31  ;;  %v982_v39 = vsel %vm680_vm5, %v1604_v30, %v1605_v29 }
 0x5cb   : > { %v986_v40 = vpack.c.bf16 %v985_v37, %v973_v33  ;;  %v988_v41 = vpack.c.bf16 %v983_v36, %v971_v32  ;;  %v989_v42 = vpack.c.bf16 %v982_v39, %v970_v35 }
 0x5cc   : > { %1028 = vmatprep.subr.bf16.mxu0 %v987_v38 }
 0x5cd   : > { %1029 = vmatpush1.bf16.msra.mxu0 %v986_v40  ;;  %1068 = vmatprep.subr.bf16.mxu1 %v989_v42 }
 0x5ce   : > { %1069 = vmatpush1.bf16.msra.mxu1 %v988_v41 }
 0x5d0   : > { %1440 = vmatmul.mubr.msk.bf16.vlgmr.msra.gmra.mxu0 %vm330_vm3, %v1437_v44 }
 0x5d1   : > { %1442 = vmatmul.mubr.msk.bf16.vlgmr.msra.gmra.mxu1 %vm330_vm3, %v1437_v44  ;;  %1190 = vmatprep.mubr.bf16.mxu0 %v1689_v8 }
 0x5d2   : > { %1230 = vmatprep.mubr.bf16.mxu1 %v1689_v8 }
 0x5d3   : > { %v997_v48 = vpop.permute.xlu0 %996 }
 0x690   : > { %v1048_v46 = vpop.f32.mrf.mxu0 }
 0x691   : > { %v1088_v47 = vpop.f32.mrf.mxu1 }
 0x692   : > { %v1049_v49 = vpop.f32.mrf.mxu0 }
 0x693   : > { %v1050_v50 = vadd.f32 %v1049_v49, %v997_v48  ;;  %v1089_v51 = vpop.f32.mrf.mxu1 }
 0x694   : > { %v1090_v52 = vadd.f32 %v1089_v51, %v997_v48  ;;  %v1051_v53 = vpop.f32.mrf.mxu0 }
 0x695   : > { %v1094_v54 = vmax.f32 %v1050_v50, 0.0  ;;  %v1091_v55 = vpop.f32.mrf.mxu1 }
 0x696   : > { %v1095_v56 = vmax.f32 %v1090_v52, 0.0  ;;  %v1052_v57 = vpop.f32.mrf.mxu0 }
 0x697   : > { %1096 = vst [vmem:[#allocation2] sm:$0xff] %v1094_v54  ;;  %v1092_v58 = vpop.f32.mrf.mxu1  ;;  %v1606_v59 = vpack.i.bf16 %v1094_v54, %v1688_v0  ;;  %v1135_v60 = vpack.c.bf16 %v1094_v54, %v1094_v54 }
 0x698   : > { %1097 = vst [vmem:[#allocation2 + $0x8] sm:$0xff] %v1095_v56  ;;  %v1611_v61 = vpack.i.bf16 %v1095_v56, %v1688_v0  ;;  %v1137_v62 = vpack.c.bf16 %v1095_v56, %v1095_v56  ;;  %v1444_v0 = vld [vmem:[%s2125_s4 + $0x10] sm:$0xff] }
 0x699   : > { %1607 = vrot.lane.b32.xlu1 %v1606_v59, %s1694_s13  ;;  %1445 = vmatprep.subr.msk.bf16.mxu0 %vm334_vm0, %v1135_v60 }
 0x69a   : > { %1612 = vrot.lane.b32.xlu0 %v1611_v61, %s1694_s13  ;;  %1447 = vmatprep.subr.msk.bf16.mxu1 %vm334_vm0, %v1137_v62  ;;  %s1411_s13 = sshll.u32 %s267_s9, 1 }
 0x69b   : > { %1171 = vmatpush1.bf16.msra.mxu0 %v1692_v10  ;;  %1211 = vmatpush1.bf16.msra.mxu1 %v1692_v10  ;;  %s269_s15 = scalar_lea.vmem [#allocation3], %s1411_s13 }
 0x69c   : > { %s1348_s16 = sshll.u32 %s269_s15, 4  ;;  %s2080_s16 = int_to_ptr.vmem [resolvable:$true] %s1348_s16 }
 0x69d   : > { %1617 = vrot.lane.b32.xlu1 %v1606_v59, %s1693_s18  ;;  %s1626_s22 = scalar_lea.vmem %s2080_s16, 32 }
 0x69e   : > { %1622 = vrot.lane.b32.xlu0 %v1611_v61, %s1693_s18  ;;  %p1627_p11 = scmp.ne.s32.totalorder %s2080_s16, %s1626_s22  ;;  %s1630_s18 = sshll.u32 %s1695_s23, 4  ;;  %s1631_s18 = int_to_ptr.vmem [resolvable:$false] %s1630_s18 }
 0x69f   : > { %s1632_s29 = scalar_lea.vmem %s1631_s18, 64  ;;  %p1633_p0 = scmp.lt.s32.totalorder %s2080_s16, %s1631_s18 }
 0x6a0   : > { %p1628_p12 = pnand %p1627_p11, %p1774_p5  ;;  %p1634_p1 = scmp.lt.s32.totalorder %s1632_s29, %s1626_s22 }
 0x6a1   : > { %1140 = vperm.xlu1 %1545, %v1444_v0  }
 0x6a2   : > { %1244 = vperm.xlu0 %1524, %v1450_v63   ;;  %p1629_p13 = pneg %p1628_p12  ;;  %p1635_p2 = por %p1634_p1, %p1633_p0 }
 0x6a4   : > { %p1636_p3 = pnand %p1635_p2, %p1629_p13 }
 0x70b   : > { %v1608_v1 = vpop.permute.xlu1 %1607 }
 0x70c   : > { %v1613_v2 = vpop.permute.xlu0 %1612  ;;  %v1610_v3 = vunpack.i.h.bf16 %v1608_v1  ;;  %v1609_v4 = vunpack.i.l.bf16 %v1608_v1 }
 0x70d   : > { %v1615_v5 = vunpack.i.h.bf16 %v1613_v2  ;;  %v1614_v9 = vunpack.i.l.bf16 %v1613_v2 }
 0x70e   : > { %v1116_v18 = vsel %vm969_vm6, %v1609_v4, %v1610_v3 }
 0x70f   : > { %v1618_v11 = vpop.permute.xlu1 %1617  ;;  %v1115_v20 = vsel %vm969_vm6, %v1610_v3, %v1614_v9  ;;  %v1117_v43 = vsel %vm969_vm6, %v1615_v5, %v1609_v4  ;;  %v1114_v22 = vsel %vm969_vm6, %v1614_v9, %v1615_v5 }
 0x710   : > { %v1620_v12 = vunpack.i.h.bf16 %v1618_v11  ;;  %v1619_v14 = vunpack.i.l.bf16 %v1618_v11  ;;  %v1623_v15 = vpop.permute.xlu0 %1622 }
 0x711   : > { %v1625_v16 = vunpack.i.h.bf16 %v1623_v15  ;;  %v1624_v17 = vunpack.i.l.bf16 %v1623_v15 }
 0x712   : > { %v1128_v45 = vsel %vm680_vm5, %v1619_v14, %v1620_v12 }
 0x713   : > { %v1127_v23 = vsel %vm680_vm5, %v1620_v12, %v1624_v17  ;;  %v1129_v24 = vsel %vm680_vm5, %v1625_v16, %v1619_v14  ;;  %v1131_v25 = vpack.c.bf16 %v1128_v45, %v1116_v18  ;;  %v1126_v6 = vsel %vm680_vm5, %v1624_v17, %v1625_v16 }
 0x714   : > { %v1130_v7 = vpack.c.bf16 %v1129_v24, %v1117_v43  ;;  %v1132_v26 = vpack.c.bf16 %v1127_v23, %v1115_v20  ;;  %v1133_v27 = vpack.c.bf16 %v1126_v6, %v1114_v22 }
 0x715   : > { %1172 = vmatprep.subr.bf16.mxu0 %v1131_v25 }
 0x716   : > { %1173 = vmatpush1.bf16.msra.mxu0 %v1130_v7  ;;  %1212 = vmatprep.subr.bf16.mxu1 %v1133_v27 }
 0x717   : > { %1213 = vmatpush1.bf16.msra.mxu1 %v1132_v26  ;;  %1451 = vmatprep.subr.msk.bf16.mxu0 %vm334_vm0, %v1979_v19 }
 0x718   : > { %1453 = vmatprep.subr.msk.bf16.mxu1 %vm334_vm0, %v1982_v21 }
 0x719   : > { %1446 = vmatmul.mubr.msk.bf16.vlgmr.msra.gmra.mxu0 %vm330_vm3, %v1443_v28 }
 0x71a   : > { %1448 = vmatmul.mubr.msk.bf16.vlgmr.msra.gmra.mxu1 %vm330_vm3, %v1443_v28  ;;  %1265 = vmatpush1.bf16.msra.mxu0 %v1692_v10 }
 0x71b   : > { %1305 = vmatpush1.bf16.msra.mxu1 %v1692_v10  ;;  %1282 = vmatprep.mubr.bf16.mxu0 %v1689_v8 }
 0x71c   : > { %1322 = vmatprep.mubr.bf16.mxu1 %v1689_v8  ;;  %v1141_v34 = vpop.permute.xlu1 %1140 }
 0x71d   : > { %v1245_v36 = vpop.permute.xlu0 %1244 }
 0x721   : > { %1452 = vmatmul.mubr.msk.bf16.vlgmr.msra.gmra.mxu0 %vm576_vm4, %v1449_v13 }
 0x722   : > { %1454 = vmatmul.mubr.msk.bf16.vlgmr.msra.gmra.mxu1 %vm576_vm4, %v1449_v13 }
 0x7d9   : > { %v1192_v19 = vpop.f32.mrf.mxu0 }
 0x7da   : > { %v1232_v21 = vpop.f32.mrf.mxu1 }
 0x7db   : > { %v1193_v29 = vpop.f32.mrf.mxu0 }
 0x7dc   : > { %v1233_v30 = vpop.f32.mrf.mxu1  ;;  %v1194_v38 = vadd.f32 %v1193_v29, %v1141_v34 }
 0x7dd   : > { %v1195_v31 = vpop.f32.mrf.mxu0  ;;  %v1234_v41 = vadd.f32 %v1233_v30, %v1141_v34 }
 0x7de   : > { %v1235_v10 = vpop.f32.mrf.mxu1 }
 0x7df   : > { %v1196_v32 = vpop.f32.mrf.mxu0 }
 0x7e0   : > { %v1236_v8 = vpop.f32.mrf.mxu1 }
 0x7e1   : > { %v1284_v33 = vpop.f32.mrf.mxu0 }
 0x7e2   : > { %v1324_v35 = vpop.f32.mrf.mxu1 }
 0x7e3   : > { %v1285_v37 = vpop.f32.mrf.mxu0 }
 0x7e4   : > { %v1286_v39 = vadd.f32 %v1285_v37, %v1245_v36  ;;  %v1325_v40 = vpop.f32.mrf.mxu1 }
 0x7e5   : > { %v1326_v42 = vadd.f32 %v1325_v40, %v1245_v36  ;;  %v1287_v44 = vpop.f32.mrf.mxu0 }
 0x7e6   : > { %v1330_v46 = vadd.f32 %v1286_v39, %v1194_v38  ;;  %v1327_v47 = vpop.f32.mrf.mxu1 }
 0x7e7   : > { %v1331_v48 = vadd.f32 %v1326_v42, %v1234_v41  ;;  %v1288_v49 = vpop.f32.mrf.mxu0 }
 0x7e8   : > { %1332 = vst [vmem:[%s269_s15] sm:$0x1] %v1330_v46  ;;  %v1328_v50 = vpop.f32.mrf.mxu1 }
 0x7e9   : > { %1333 = vst [vmem:[%s269_s15 + $0x1] sm:$0x1] %v1331_v48 }
 0x7ea   : > { %1639 = shalt.err (!%p1636_p3)
}
 0x7eb   : > { %s1640_s8 = scalar_lea.hbm %s2078_s21, 32  ;;  %s1644_s13 = scalar_lea.hbm %s2128_s7, 64 }
 0x7ec   : > { %p1641_p4 = scmp.ne.s32.totalorder %s2078_s21, %s1640_s8  ;;  %p1645_p9 = scmp.lt.s32.totalorder %s2078_s21, %s2128_s7 }
 0x7ed   : > { %p1646_p10 = scmp.lt.s32.totalorder %s1644_s13, %s1640_s8 }
 0x7ee   : > { %p1642_p7 = pnand %p1641_p4, %p1774_p5 }
 0x7ef   : > { %p1647_p11 = por %p1646_p10, %p1645_p9 }
 0x7f0   : > { %p1643_p8 = pneg %p1642_p7 }
 0x7f2   : > { %p1648_p12 = pnand %p1647_p11, %p1643_p8 }
 0x7f4   : > { %1651 = shalt.err (!%p1648_p12)
}
 0x7f5   : > { %1459 = dma.vmem_to_hbm [thread:$0]  (%p1774_p5), %s2080_s16, 32, %s2078_s21, %s1335_s28  }
 0x7f6 PF: > { %p1465_p13 = scmp.ge.s32.totalorder %s1686_s27, 2  ;;  %s1360_s17 = sand.u32 1, %s1674_s24  }
 0x7f7   : > { %s1361_s20 = scalar_lea.sflag [#allocation4], %s1360_s17 }
 0x7f8   : > { %p1462_p0 = pnand %p1465_p13, %p1778_p6 }
 0x7fa   : > { %p1463_p1 = pneg %p1462_p0 }
 0x7fc   : > { %1669 = dma.done.wait (%p1463_p1), %s1361_s20, 32  }
 0x7fd   : > { %1671 = vsyncadd (%p1463_p1), %s1361_s20, 4294967264  ;;  %p17_p2 = scmp.ge.s32.totalorder %s1761_s30, 4   ;;  %s2131_s24 = smov %s1678_s25 }
 0x7fe   : > { %s2132_s25 = smov %s1682_s26  ;;  %s2133_s26 = smov %s1772_s10 }
 0x7ff   : > { %s2134_s27 = smov %s1761_s30  ;;  %19 = sbr.rel (!%p17_p2) target bundleno = 3 (0x3), region = 93 }
 0x804   :  { %1366 = vsyncpa [#allocation4], 1 }
 0x805   :  { %1368 = vsyncpa [#allocation4 + $0x1], 1 }

</bundles_post_ra>
